<compile_context>
chip_gen: v5e
topology: v5e:2x2
jax: 0.10.0
libtpu: 0.0.40
codegen_flags: <defaults>
</compile_context>

<pallas_src>
import math

import jax
import jax.numpy as jnp
from jax import lax
from jax.experimental import pallas as pl
from jax.experimental.pallas import tpu as pltpu

_INV_SQRT2 = 0.7071067811865476  # 1/sqrt(2): multiply, never divide


def _gelu_exact(h):
    # Exact-erf GELU (matches torch.erf reference), f32 math.
    return h * (0.5 * (1.0 + lax.erf(h * _INV_SQRT2)))


def _mlp_kernel_fused(x_ref, w1_ref, b1_ref, w2_ref, b2_ref, o_ref):
    """Whole intermediate dim resident: single pass, no accumulator scratch."""
    h = jnp.dot(x_ref[...], w1_ref[...], preferred_element_type=jnp.float32)
    h = _gelu_exact(h + b1_ref[...])                       # (1, I) broadcasts
    y = jnp.dot(h.astype(w2_ref.dtype), w2_ref[...],
                preferred_element_type=jnp.float32)
    o_ref[...] = (y + b2_ref[...]).astype(o_ref.dtype)


def _mlp_kernel_tiled(x_ref, w1_ref, b1_ref, w2_ref, b2_ref, o_ref, acc_ref):
    """Intermediate dim tiled: reduce over k into an f32 VMEM accumulator."""
    k = pl.program_id(1)

    @pl.when(k == 0)
    def _init():
        # Seed with the output bias so finalize is just a cast + store.
        acc_ref[...] = jnp.broadcast_to(
            b2_ref[...], acc_ref.shape).astype(jnp.float32)

    # Expansion for this intermediate chunk: (TB, H) @ (H, TI) on the MXU.
    h = jnp.dot(x_ref[...], w1_ref[...], preferred_element_type=jnp.float32)
    h = _gelu_exact(h + b1_ref[...])                       # (1, TI) broadcasts

    # Contraction partial: (TB, TI) @ (TI, H), accumulated in f32 scratch.
    acc_ref[...] += jnp.dot(h.astype(w2_ref.dtype), w2_ref[...],
                            preferred_element_type=jnp.float32)

    @pl.when(k == pl.num_programs(1) - 1)
    def _finalize():
        o_ref[...] = acc_ref[...].astype(o_ref.dtype)


def _pick_tile(dim, candidates):
    for c in candidates:
        if c <= dim and dim % c == 0:
            return c
    return dim


def mlp_pallas(x, w1, b1, w2, b2):
    """x: (B, H); w1: (H, I); b1: (I,); w2: (I, H); b2: (H,)."""
    B, H = x.shape
    I = w1.shape[1]
    assert w1.shape == (H, I) and w2.shape == (I, H)
    assert b1.shape == (I,) and b2.shape == (H,)

    # Batch tile: MXU-friendly when the batch allows it, sublane-aligned always.
    B_pad = ((B + 7) // 8) * 8
    TB = _pick_tile(B_pad, (256, 128, 64, 32, 16, 8))
    B_pad = ((B_pad + TB - 1) // TB) * TB

    # Intermediate tile: bounds live (TB, TI) activation + resident weight chunk.
    TI = _pick_tile(I, (1024, 512, 256, 128))

    grid_b = B_pad // TB
    grid_k = I // TI

    if B_pad != B:
        x = jnp.pad(x, ((0, B_pad - B), (0, 0)))

    b1_2d = b1.reshape(1, I)
    b2_2d = b2.reshape(1, H)

    itemsize = jnp.dtype(x.dtype).itemsize
    # Double-buffered tiles (x, w1 chunk, b1 chunk, w2 chunk, b2, out) plus the
    # f32 accumulator; clamp to 64 MiB so the request is valid on v7x too.
    tile_bytes = itemsize * (TB * H + H * TI + TI + TI * H + H + TB * H)
    vmem_needed = 2 * tile_bytes + 4 * TB * H
    vmem_limit = int(min(64 * 2**20, max(32 * 2**20, 2 * vmem_needed)))

    cost = pl.CostEstimate(
        flops=2 * B_pad * H * I * 2,            # two matmuls
        transcendentals=B_pad * I,              # one erf per intermediate elem
        bytes_accessed=itemsize * (2 * B_pad * H                     # x + out
                                   + grid_b * (2 * H * I + I + H)),  # weights/biases
    )

    if grid_k == 1:
        # Fully fused single-pass kernel: no scratch, direct output write.
        out = pl.pallas_call(
            _mlp_kernel_fused,
            out_shape=jax.ShapeDtypeStruct((B_pad, H), x.dtype),
            grid_spec=pltpu.PrefetchScalarGridSpec(
                num_scalar_prefetch=0,
                grid=(grid_b,),
                in_specs=[
                    pl.BlockSpec((TB, H), lambda i: (i, 0)),   # x tile
                    pl.BlockSpec((H, I), lambda i: (0, 0)),    # w1 (resident)
                    pl.BlockSpec((1, I), lambda i: (0, 0)),    # b1 (resident)
                    pl.BlockSpec((I, H), lambda i: (0, 0)),    # w2 (resident)
                    pl.BlockSpec((1, H), lambda i: (0, 0)),    # b2 (resident)
                ],
                out_specs=pl.BlockSpec((TB, H), lambda i: (i, 0)),
            ),
            compiler_params=pltpu.CompilerParams(
                dimension_semantics=("parallel",),
                vmem_limit_bytes=vmem_limit,
            ),
            cost_estimate=cost,
        )(x, w1, b1_2d, w2, b2_2d)
    else:
        out = pl.pallas_call(
            _mlp_kernel_tiled,
            out_shape=jax.ShapeDtypeStruct((B_pad, H), x.dtype),
            grid_spec=pltpu.PrefetchScalarGridSpec(
                num_scalar_prefetch=0,
                grid=(grid_b, grid_k),
                in_specs=[
                    pl.BlockSpec((TB, H), lambda i, k: (i, 0)),   # x tile
                    pl.BlockSpec((H, TI), lambda i, k: (0, k)),   # w1 chunk
                    pl.BlockSpec((1, TI), lambda i, k: (0, k)),   # b1 chunk
                    pl.BlockSpec((TI, H), lambda i, k: (k, 0)),   # w2 chunk
                    pl.BlockSpec((1, H), lambda i, k: (0, 0)),    # b2 (resident)
                ],
                out_specs=pl.BlockSpec((TB, H), lambda i, k: (i, 0)),
                scratch_shapes=[pltpu.VMEM((TB, H), jnp.float32)],
            ),
            compiler_params=pltpu.CompilerParams(
                dimension_semantics=("parallel", "arbitrary"),
                vmem_limit_bytes=vmem_limit,
            ),
            cost_estimate=cost,
        )(x, w1, b1_2d, w2, b2_2d)

    return out[:B] if B_pad != B else out


def mlp_reference(x, w1, b1, w2, b2):
    h = x @ w1 + b1
    h = h * 0.5 * (1.0 + lax.erf(h * _INV_SQRT2))
    return h @ w2 + b2


if __name__ == "__main__":
    batch = 8
    hidden_size = 128
    intermediate_size = 512

    key = jax.random.PRNGKey(0)
    kx, k1, k2, k3, k4 = jax.random.split(key, 5)

    x = jax.random.normal(kx, (batch, hidden_size), dtype=jnp.float32)

    # Deterministic init mirroring nn.Linear's uniform(-1/sqrt(in), 1/sqrt(in)),
    # stored pre-transposed as (in_features, out_features).
    bound1 = 1.0 / math.sqrt(hidden_size)
    w1 = jax.random.uniform(k1, (hidden_size, intermediate_size),
                            minval=-bound1, maxval=bound1, dtype=jnp.float32)
    b1 = jax.random.uniform(k2, (intermediate_size,),
                            minval=-bound1, maxval=bound1, dtype=jnp.float32)

    bound2 = 1.0 / math.sqrt(intermediate_size)
    w2 = jax.random.uniform(k3, (intermediate_size, hidden_size),
                            minval=-bound2, maxval=bound2, dtype=jnp.float32)
    b2 = jax.random.uniform(k4, (hidden_size,),
                            minval=-bound2, maxval=bound2, dtype=jnp.float32)

    out = mlp_pallas(x, w1, b1, w2, b2)
    jax.block_until_ready(out)

    ref = mlp_reference(x, w1, b1, w2, b2)
    assert out.shape == (batch, hidden_size)
    assert jnp.allclose(out, ref, atol=1e-4, rtol=1e-4)

    print("KERNEL_OK")
</pallas_src>

<mosaic_0001>
module attributes {stable_mosaic.version = 11 : i64} {
  func.func @_mlp_kernel_fused(%arg0: i32, %arg1: memref<8x128xf32, #tpu.memory_space<vmem>>, %arg2: memref<128x512xf32, #tpu.memory_space<vmem>>, %arg3: memref<1x512xf32, #tpu.memory_space<vmem>>, %arg4: memref<512x128xf32, #tpu.memory_space<vmem>>, %arg5: memref<1x128xf32, #tpu.memory_space<vmem>>, %arg6: memref<8x128xf32, #tpu.memory_space<vmem>>) attributes {dimension_semantics = [#tpu.dimension_semantics<parallel>], iteration_bounds = array<i64: 1>, scalar_prefetch = 0 : i64, scratch_operands = 0 : i64, tpu.core_type = #tpu.core_type<tc>, window_params = [{transform_indices = @transform_0, window_bounds = array<i64: 8, 128>}, {pipeline_mode = #tpu.pipeline_mode<synchronous>, transform_indices = @transform_1, window_bounds = array<i64: 128, 512>}, {pipeline_mode = #tpu.pipeline_mode<synchronous>, transform_indices = @transform_2, window_bounds = array<i64: 1, 512>}, {pipeline_mode = #tpu.pipeline_mode<synchronous>, transform_indices = @transform_3, window_bounds = array<i64: 512, 128>}, {pipeline_mode = #tpu.pipeline_mode<synchronous>, transform_indices = @transform_4, window_bounds = array<i64: 1, 128>}, {transform_indices = @transform_5, window_bounds = array<i64: 8, 128>}]} {
    %c0 = arith.constant 0 : index
    %c0_0 = arith.constant 0 : index
    %0 = vector.load %arg1[%c0, %c0_0] : memref<8x128xf32, #tpu.memory_space<vmem>>, vector<8x128xf32>
    %c0_1 = arith.constant 0 : index
    %c0_2 = arith.constant 0 : index
    %1 = vector.load %arg2[%c0_1, %c0_2] : memref<128x512xf32, #tpu.memory_space<vmem>>, vector<128x512xf32>
    %cst = arith.constant dense<0.000000e+00> : vector<8x512xf32>
    %2 = tpu.matmul %0, %1, %cst {dimension_numbers = #tpu.dot_dimension_numbers<[1], [0], [0], [1], [0, 0, 1, 1], [], []>} : vector<8x128xf32>, vector<128x512xf32>, vector<8x512xf32> -> vector<8x512xf32>
    %c0_3 = arith.constant 0 : index
    %c0_4 = arith.constant 0 : index
    %3 = vector.load %arg3[%c0_3, %c0_4] : memref<1x512xf32, #tpu.memory_space<vmem>>, vector<1x512xf32>
    %4 = vector.broadcast %3 : vector<1x512xf32> to vector<8x512xf32>
    %5 = arith.addf %2, %4 : vector<8x512xf32>
    %cst_5 = arith.constant 0.707106769 : f32
    %6 = vector.broadcast %cst_5 : f32 to vector<8x512xf32>
    %7 = arith.mulf %5, %6 : vector<8x512xf32>
    %8 = math.erf %7 : vector<8x512xf32>
    %cst_6 = arith.constant 1.000000e+00 : f32
    %9 = vector.broadcast %cst_6 : f32 to vector<8x512xf32>
    %10 = arith.addf %9, %8 : vector<8x512xf32>
    %cst_7 = arith.constant 5.000000e-01 : f32
    %11 = vector.broadcast %cst_7 : f32 to vector<8x512xf32>
    %12 = arith.mulf %11, %10 : vector<8x512xf32>
    %13 = arith.mulf %5, %12 : vector<8x512xf32>
    %c0_8 = arith.constant 0 : index
    %c0_9 = arith.constant 0 : index
    %14 = vector.load %arg4[%c0_8, %c0_9] : memref<512x128xf32, #tpu.memory_space<vmem>>, vector<512x128xf32>
    %cst_10 = arith.constant dense<0.000000e+00> : vector<8x128xf32>
    %15 = tpu.matmul %13, %14, %cst_10 {dimension_numbers = #tpu.dot_dimension_numbers<[1], [0], [0], [1], [0, 0, 1, 1], [], []>} : vector<8x512xf32>, vector<512x128xf32>, vector<8x128xf32> -> vector<8x128xf32>
    %c0_11 = arith.constant 0 : index
    %c0_12 = arith.constant 0 : index
    %16 = vector.load %arg5[%c0_11, %c0_12] : memref<1x128xf32, #tpu.memory_space<vmem>>, vector<1x128xf32>
    %17 = vector.broadcast %16 : vector<1x128xf32> to vector<8x128xf32>
    %18 = arith.addf %15, %17 : vector<8x128xf32>
    %c0_13 = arith.constant 0 : index
    %c0_14 = arith.constant 0 : index
    %19 = vector.load %arg6[%c0_13, %c0_14] : memref<8x128xf32, #tpu.memory_space<vmem>>, vector<8x128xf32>
    tpu.vector_store %arg6[%c0_13, %c0_14], %18 {strides = array<i32>} : memref<8x128xf32, #tpu.memory_space<vmem>>, vector<8x128xf32>,
    return
  }
  func.func @transform_0(%arg0: i32) -> (i32, i32) {
    %c0_i32 = arith.constant 0 : i32
    %c0_i32_0 = arith.constant 0 : i32
    return %arg0, %c0_i32 : i32, i32
  }
  func.func @transform_1(%arg0: i32) -> (i32, i32) {
    %c0_i32 = arith.constant 0 : i32
    %c0_i32_0 = arith.constant 0 : i32
    %c0_i32_1 = arith.constant 0 : i32
    return %c0_i32, %c0_i32_0 : i32, i32
  }
  func.func @transform_2(%arg0: i32) -> (i32, i32) {
    %c0_i32 = arith.constant 0 : i32
    %c0_i32_0 = arith.constant 0 : i32
    %c0_i32_1 = arith.constant 0 : i32
    return %c0_i32, %c0_i32_0 : i32, i32
  }
  func.func @transform_3(%arg0: i32) -> (i32, i32) {
    %c0_i32 = arith.constant 0 : i32
    %c0_i32_0 = arith.constant 0 : i32
    %c0_i32_1 = arith.constant 0 : i32
    return %c0_i32, %c0_i32_0 : i32, i32
  }
  func.func @transform_4(%arg0: i32) -> (i32, i32) {
    %c0_i32 = arith.constant 0 : i32
    %c0_i32_0 = arith.constant 0 : i32
    %c0_i32_1 = arith.constant 0 : i32
    return %c0_i32, %c0_i32_0 : i32, i32
  }
  func.func @transform_5(%arg0: i32) -> (i32, i32) {
    %c0_i32 = arith.constant 0 : i32
    %c0_i32_0 = arith.constant 0 : i32
    return %arg0, %c0_i32 : i32, i32
  }
}

</mosaic_0001>

<bundles_post_ra>
// kernel: tpu_custom_call.1
= control target key start
LH: loop header
LB: loop body
LE: loop exit
PB: predicated region body
PF: predicated region fallthrough
CT: control target
= control target key end

     0   :  { %10 = vsyncpa [#allocation3], 0  ;;  %s916_s0 = inlined_call_operand.hbm [shape: f32[8,128], index: 0, kind: input, shape index: {}]   ;;  %s917_s1 = inlined_call_operand.hbm [shape: f32[128,512], index: 1, kind: input, shape index: {}]   ;;  %s918_s2 = inlined_call_operand.hbm [shape: f32[1,512], index: 2, kind: input, shape index: {}]   ;;  %s919_s3 = inlined_call_operand.hbm [shape: f32[512,128], index: 3, kind: input, shape index: {}]   ;;  %s920_s4 = inlined_call_operand.vmem [shape: f32[1,128], index: 4, kind: input, shape index: {}]   ;;  %s921_s5 = inlined_call_operand.hbm [shape: f32[8,128], index: 5, kind: output, shape index: {}]  }
   0x1   :  { %11 = vsyncpa [#allocation6], 0 }
   0x2   :  { %12 = vsyncpa [#allocation9], 0  ;;  %s29_s20 = sshll.u32 %s917_s1, 4  ;;  %s30_s20 = int_to_ptr.hbm [resolvable:$true] %s29_s20 }
   0x3   :  { %13 = vsyncpa [#allocation4], 0  ;;  %s729_s21 = smov [#allocation5]   ;;  %s19_s25 = sshll.u32 %s916_s0, 4  ;;  %s20_s25 = int_to_ptr.hbm [resolvable:$true] %s19_s25 }
   0x4   :  { %s31_s22 = sshll.u32 %s729_s21, 4  ;;  %s730_s26 = smov 512   ;;  %s32_s22 = int_to_ptr.vmem [resolvable:$true] %s31_s22 }
   0x5   :  { %s731_s27 = smov 32   ;;  %s732_s28 = smov [#allocation2]  }
   0x6   :  { %37 = dma.hbm_to_vmem [thread:$0]  %s30_s20, 8192, %s32_s22, [#allocation6], %s730_s26, %s730_s26, %s731_s27  }
   0x7   :  { %s21_s29 = sshll.u32 %s732_s28, 4  ;;  %s43_s7 = sshll.u32 %s918_s2, 4  ;;  %s22_s29 = int_to_ptr.vmem [resolvable:$true] %s21_s29  ;;  %s44_s7 = int_to_ptr.hbm [resolvable:$true] %s43_s7 }
   0x8   :  { %24 = dma.hbm_to_vmem [thread:$0]  %s20_s25, 128, %s22_s29, [#allocation3]  }
   0x9   :  { %s53_s9 = sshll.u32 %s919_s3, 4  ;;  %s733_s10 = smov [#allocation7]   ;;  %s54_s9 = int_to_ptr.hbm [resolvable:$true] %s53_s9 }
   0xa   :  { %s45_s11 = sshll.u32 %s733_s10, 4  ;;  %s734_s0 = smov [#allocation8]   ;;  %s46_s11 = int_to_ptr.vmem [resolvable:$true] %s45_s11 }
   0xb   :  { %48 = dma.hbm_to_vmem [thread:$0]  %s44_s7, 64, %s46_s11, [#allocation6]  }
   0xc   :  { %s55_s12 = sshll.u32 %s734_s0, 4  ;;  %s735_s13 = smov 128   ;;  %s56_s12 = int_to_ptr.vmem [resolvable:$true] %s55_s12 }
   0xd   :  { %s736_s14 = smov 8  }
   0xe   :  { %61 = dma.hbm_to_vmem [thread:$0]  %s54_s9, 8192, %s56_s12, [#allocation9], %s735_s13, %s735_s13, %s736_s14  }
   0xf   :  { %721 = dma.done.wait [#allocation3], 128  }
  0x10   :  { %722 = vsyncadd [#allocation3], 4294967168 }
  0x11   :  { %723 = dma.done.wait [#allocation6], 8256  }
  0x12   :  { %724 = vsyncadd [#allocation6], 4294959040 }
  0x13   :  { %725 = dma.done.wait [#allocation9], 8192  }
  0x14   :  { %726 = vsyncadd [#allocation9], 4294959104  ;;  %v141_v0 = vld [vmem:[#allocation5 + $0x1e0] sm:$0xff]  ;;  %v142_v1 = vld [vmem:[#allocation5 + $0x1e8] sm:$0xff]  ;;  %s737_s15 = smov [#allocation10]   ;;  %s567_s19 = sshll.u32 %s921_s5, 4  ;;  %s568_s19 = int_to_ptr.hbm [resolvable:$true] %s567_s19 }
  0x15   :  { %v143_v2 = vld [vmem:[#allocation5 + $0x1f0] sm:$0xff]  ;;  %155 = vmatpush.msra.mxu0 %v141_v0  ;;  %175 = vmatpush.msra.mxu1 %v142_v1  ;;  %v144_v3 = vld [vmem:[#allocation5 + $0x1f8] sm:$0xff]  ;;  %v137_v4 = vld [vmem:[#allocation5 + $0x1c0] sm:$0xff]  ;;  %s565_s16 = sshll.u32 %s737_s15, 4  ;;  %s566_s16 = int_to_ptr.vmem [resolvable:$true] %s565_s16 }
  0x16   :  { %v138_v5 = vld [vmem:[#allocation5 + $0x1c8] sm:$0xff]  ;;  %195 = vmatpush.msra.mxu2 %v143_v2  ;;  %215 = vmatpush.msra.mxu3 %v144_v3  ;;  %v139_v6 = vld [vmem:[#allocation5 + $0x1d0] sm:$0xff]  ;;  %v140_v7 = vld [vmem:[#allocation5 + $0x1d8] sm:$0xff] }
  0x17   :  { %v133_v8 = vld [vmem:[#allocation5 + $0x1a0] sm:$0xff]  ;;  %156 = vmatpush.msra.mxu0 %v137_v4  ;;  %176 = vmatpush.msra.mxu1 %v138_v5  ;;  %v134_v9 = vld [vmem:[#allocation5 + $0x1a8] sm:$0xff]  ;;  %v135_v10 = vld [vmem:[#allocation5 + $0x1b0] sm:$0xff] }
  0x18   :  { %v136_v11 = vld [vmem:[#allocation5 + $0x1b8] sm:$0xff]  ;;  %196 = vmatpush.msra.mxu2 %v139_v6  ;;  %216 = vmatpush.msra.mxu3 %v140_v7  ;;  %v129_v12 = vld [vmem:[#allocation5 + $0x180] sm:$0xff]  ;;  %v130_v13 = vld [vmem:[#allocation5 + $0x188] sm:$0xff] }
  0x19   :  { %157 = vmatpush.msra.mxu0 %v133_v8  ;;  %177 = vmatpush.msra.mxu1 %v134_v9  ;;  %v131_v14 = vld [vmem:[#allocation5 + $0x190] sm:$0xff]  ;;  %v132_v15 = vld [vmem:[#allocation5 + $0x198] sm:$0xff]  ;;  %v125_v16 = vld [vmem:[#allocation5 + $0x160] sm:$0xff] }
  0x1a   :  { %197 = vmatpush.msra.mxu2 %v135_v10  ;;  %217 = vmatpush.msra.mxu3 %v136_v11  ;;  %v126_v17 = vld [vmem:[#allocation5 + $0x168] sm:$0xff]  ;;  %v127_v18 = vld [vmem:[#allocation5 + $0x170] sm:$0xff]  ;;  %v128_v19 = vld [vmem:[#allocation5 + $0x178] sm:$0xff] }
  0x1b   :  { %158 = vmatpush.msra.mxu0 %v129_v12  ;;  %178 = vmatpush.msra.mxu1 %v130_v13  ;;  %v121_v20 = vld [vmem:[#allocation5 + $0x140] sm:$0xff]  ;;  %v122_v21 = vld [vmem:[#allocation5 + $0x148] sm:$0xff]  ;;  %v123_v22 = vld [vmem:[#allocation5 + $0x150] sm:$0xff] }
  0x1c   :  { %198 = vmatpush.msra.mxu2 %v131_v14  ;;  %218 = vmatpush.msra.mxu3 %v132_v15  ;;  %v124_v23 = vld [vmem:[#allocation5 + $0x158] sm:$0xff]  ;;  %v117_v24 = vld [vmem:[#allocation5 + $0x120] sm:$0xff]  ;;  %v118_v25 = vld [vmem:[#allocation5 + $0x128] sm:$0xff] }
  0x1d   :  { %159 = vmatpush.msra.mxu0 %v125_v16  ;;  %179 = vmatpush.msra.mxu1 %v126_v17  ;;  %v119_v26 = vld [vmem:[#allocation5 + $0x130] sm:$0xff]  ;;  %v120_v27 = vld [vmem:[#allocation5 + $0x138] sm:$0xff]  ;;  %v113_v28 = vld [vmem:[#allocation5 + $0x100] sm:$0xff] }
  0x1e   :  { %199 = vmatpush.msra.mxu2 %v127_v18  ;;  %219 = vmatpush.msra.mxu3 %v128_v19  ;;  %v114_v29 = vld [vmem:[#allocation5 + $0x108] sm:$0xff]  ;;  %v115_v30 = vld [vmem:[#allocation5 + $0x110] sm:$0xff]  ;;  %v116_v31 = vld [vmem:[#allocation5 + $0x118] sm:$0xff] }
  0x1f   :  { %160 = vmatpush.msra.mxu0 %v121_v20  ;;  %180 = vmatpush.msra.mxu1 %v122_v21  ;;  %v109_v32 = vld [vmem:[#allocation5 + $0xe0] sm:$0xff]  ;;  %v110_v33 = vld [vmem:[#allocation5 + $0xe8] sm:$0xff]  ;;  %v111_v34 = vld [vmem:[#allocation5 + $0xf0] sm:$0xff] }
  0x20   :  { %200 = vmatpush.msra.mxu2 %v123_v22  ;;  %220 = vmatpush.msra.mxu3 %v124_v23  ;;  %v112_v35 = vld [vmem:[#allocation5 + $0xf8] sm:$0xff]  ;;  %v105_v36 = vld [vmem:[#allocation5 + $0xc0] sm:$0xff]  ;;  %v106_v37 = vld [vmem:[#allocation5 + $0xc8] sm:$0xff] }
  0x21   :  { %161 = vmatpush.msra.mxu0 %v117_v24  ;;  %181 = vmatpush.msra.mxu1 %v118_v25  ;;  %v107_v38 = vld [vmem:[#allocation5 + $0xd0] sm:$0xff]  ;;  %v108_v39 = vld [vmem:[#allocation5 + $0xd8] sm:$0xff]  ;;  %v101_v40 = vld [vmem:[#allocation5 + $0xa0] sm:$0xff] }
  0x22   :  { %201 = vmatpush.msra.mxu2 %v119_v26  ;;  %221 = vmatpush.msra.mxu3 %v120_v27  ;;  %v102_v41 = vld [vmem:[#allocation5 + $0xa8] sm:$0xff]  ;;  %v103_v42 = vld [vmem:[#allocation5 + $0xb0] sm:$0xff]  ;;  %v104_v43 = vld [vmem:[#allocation5 + $0xb8] sm:$0xff] }
  0x23   :  { %162 = vmatpush.msra.mxu0 %v113_v28  ;;  %182 = vmatpush.msra.mxu1 %v114_v29  ;;  %v97_v44 = vld [vmem:[#allocation5 + $0x80] sm:$0xff]  ;;  %v98_v45 = vld [vmem:[#allocation5 + $0x88] sm:$0xff]  ;;  %v99_v46 = vld [vmem:[#allocation5 + $0x90] sm:$0xff] }
  0x24   :  { %202 = vmatpush.msra.mxu2 %v115_v30  ;;  %222 = vmatpush.msra.mxu3 %v116_v31  ;;  %v100_v47 = vld [vmem:[#allocation5 + $0x98] sm:$0xff]  ;;  %v93_v48 = vld [vmem:[#allocation5 + $0x60] sm:$0xff]  ;;  %v94_v49 = vld [vmem:[#allocation5 + $0x68] sm:$0xff] }
  0x25   :  { %163 = vmatpush.msra.mxu0 %v109_v32  ;;  %183 = vmatpush.msra.mxu1 %v110_v33  ;;  %v95_v50 = vld [vmem:[#allocation5 + $0x70] sm:$0xff]  ;;  %v96_v51 = vld [vmem:[#allocation5 + $0x78] sm:$0xff]  ;;  %v89_v52 = vld [vmem:[#allocation5 + $0x40] sm:$0xff] }
  0x26   :  { %203 = vmatpush.msra.mxu2 %v111_v34  ;;  %223 = vmatpush.msra.mxu3 %v112_v35  ;;  %v90_v53 = vld [vmem:[#allocation5 + $0x48] sm:$0xff]  ;;  %v91_v54 = vld [vmem:[#allocation5 + $0x50] sm:$0xff]  ;;  %v92_v55 = vld [vmem:[#allocation5 + $0x58] sm:$0xff] }
  0x27   :  { %164 = vmatpush.msra.mxu0 %v105_v36  ;;  %184 = vmatpush.msra.mxu1 %v106_v37  ;;  %v85_v56 = vld [vmem:[#allocation5 + $0x20] sm:$0xff]  ;;  %v86_v57 = vld [vmem:[#allocation5 + $0x28] sm:$0xff]  ;;  %v87_v58 = vld [vmem:[#allocation5 + $0x30] sm:$0xff] }
  0x28   :  { %204 = vmatpush.msra.mxu2 %v107_v38  ;;  %224 = vmatpush.msra.mxu3 %v108_v39  ;;  %v88_v59 = vld [vmem:[#allocation5 + $0x38] sm:$0xff]  ;;  %v81_v60 = vld [vmem:[#allocation5] sm:$0xff]  ;;  %v82_v61 = vld [vmem:[#allocation5 + $0x8] sm:$0xff] }
  0x29   :  { %165 = vmatpush.msra.mxu0 %v101_v40  ;;  %185 = vmatpush.msra.mxu1 %v102_v41  ;;  %v83_v62 = vld [vmem:[#allocation5 + $0x10] sm:$0xff]  ;;  %v84_v63 = vld [vmem:[#allocation5 + $0x18] sm:$0xff]  ;;  %v145_v1 = vld [vmem:[#allocation7] sm:$0xf] }
  0x2a   :  { %205 = vmatpush.msra.mxu2 %v103_v42  ;;  %225 = vmatpush.msra.mxu3 %v104_v43  ;;  %v80_v0 = vld [vmem:[#allocation2] sm:$0xff]  ;;  %v147_v2 = vperm.slane %v145_v1, 0  ;;  %v148_v3 = vperm.slane %v145_v1, 1  ;;  %v149_v14 = vperm.slane %v145_v1, 2  ;;  %v150_v15 = vperm.slane %v145_v1, 3  ;;  %v424_v18 = vld [vmem:[#allocation8 + $0x68] sm:$0xff] }
  0x2b   :  { %166 = vmatpush.msra.mxu0 %v97_v44  ;;  %186 = vmatpush.msra.mxu1 %v98_v45  ;;  %v426_v8 = vld [vmem:[#allocation8 + $0x78] sm:$0xff]  ;;  %v425_v12 = vld [vmem:[#allocation8 + $0x70] sm:$0xff]  ;;  %v440_v19 = vld [vmem:[#allocation8 + $0xe8] sm:$0xff] }
  0x2c   :  { %206 = vmatpush.msra.mxu2 %v99_v46  ;;  %226 = vmatpush.msra.mxu3 %v100_v47  ;;  %v442_v9 = vld [vmem:[#allocation8 + $0xf8] sm:$0xff]  ;;  %v441_v13 = vld [vmem:[#allocation8 + $0xf0] sm:$0xff]  ;;  %v423_v24 = vld [vmem:[#allocation8 + $0x60] sm:$0xff] }
  0x2d   :  { %167 = vmatpush.msra.mxu0 %v93_v48  ;;  %187 = vmatpush.msra.mxu1 %v94_v49  ;;  %v439_v25 = vld [vmem:[#allocation8 + $0xe0] sm:$0xff]  ;;  %v458_v26 = vld [vmem:[#allocation8 + $0x178] sm:$0xff]  ;;  %v457_v44 = vld [vmem:[#allocation8 + $0x170] sm:$0xff] }
  0x2e   :  { %207 = vmatpush.msra.mxu2 %v95_v50  ;;  %227 = vmatpush.msra.mxu3 %v96_v51  ;;  %v474_v29 = vld [vmem:[#allocation8 + $0x1f8] sm:$0xff]  ;;  %v473_v48 = vld [vmem:[#allocation8 + $0x1f0] sm:$0xff] }
  0x2f   :  { %168 = vmatpush.msra.mxu0 %v89_v52  ;;  %188 = vmatpush.msra.mxu1 %v90_v53  ;;  %v422_v42 = vld [vmem:[#allocation8 + $0x58] sm:$0xff]  ;;  %v421_v49 = vld [vmem:[#allocation8 + $0x50] sm:$0xff] }
  0x30   :  { %208 = vmatpush.msra.mxu2 %v91_v54  ;;  %228 = vmatpush.msra.mxu3 %v92_v55  ;;  %v438_v43 = vld [vmem:[#allocation8 + $0xd8] sm:$0xff]  ;;  %v437_v50 = vld [vmem:[#allocation8 + $0xd0] sm:$0xff]  ;;  %v456_v54 = vld [vmem:[#allocation8 + $0x168] sm:$0xff] }
  0x31   :  { %169 = vmatpush.msra.mxu0 %v85_v56  ;;  %189 = vmatpush.msra.mxu1 %v86_v57  ;;  %v472_v55 = vld [vmem:[#allocation8 + $0x1e8] sm:$0xff] }
  0x32   :  { %209 = vmatpush.msra.mxu2 %v87_v58  ;;  %229 = vmatpush.msra.mxu3 %v88_v59  ;;  %v420_v56 = vld [vmem:[#allocation8 + $0x48] sm:$0xff] }
  0x33   :  { %170 = vmatpush.msra.mxu0 %v81_v60  ;;  %190 = vmatpush.msra.mxu1 %v82_v61 }
  0x34   :  { %210 = vmatpush.msra.mxu2 %v83_v62  ;;  %230 = vmatpush.msra.mxu3 %v84_v63 }
  0x35   :  { %171 = vmatmul.f32.vlgmr.msra.gmra.mxu0 %v80_v0  ;;  %191 = vmatmul.f32.vlgmr.msra.gmra.mxu1 %v80_v0 }
  0x36   :  { %211 = vmatmul.f32.vlgmr.msra.gmra.mxu2 %v80_v0  ;;  %231 = vmatmul.f32.vlgmr.msra.gmra.mxu3 %v80_v0 }
  0x37   :  { %479 = vmatpush.msrb.mxu0 %v426_v8  ;;  %499 = vmatpush.msrb.mxu1 %v442_v9 }
  0x38   :  { %519 = vmatpush.msrb.mxu2 %v458_v26  ;;  %539 = vmatpush.msrb.mxu3 %v474_v29  ;;  %v454_v29 = vld [vmem:[#allocation8 + $0x158] sm:$0xff] }
  0x39   :  { %480 = vmatpush.msrb.mxu0 %v425_v12  ;;  %500 = vmatpush.msrb.mxu1 %v441_v13 }
  0x3a   :  { %520 = vmatpush.msrb.mxu2 %v457_v44  ;;  %540 = vmatpush.msrb.mxu3 %v473_v48 }
  0x3b   :  { %481 = vmatpush.msrb.mxu0 %v424_v18  ;;  %501 = vmatpush.msrb.mxu1 %v440_v19 }
  0x3c   :  { %521 = vmatpush.msrb.mxu2 %v456_v54  ;;  %541 = vmatpush.msrb.mxu3 %v472_v55  ;;  %v468_v54 = vld [vmem:[#allocation8 + $0x1c8] sm:$0xff] }
  0x3d   :  { %482 = vmatpush.msrb.mxu0 %v423_v24  ;;  %502 = vmatpush.msrb.mxu1 %v439_v25  ;;  %v435_v24 = vld [vmem:[#allocation8 + $0xc0] sm:$0xff] }
  0x3f   :  { %483 = vmatpush.msrb.mxu0 %v422_v42  ;;  %503 = vmatpush.msrb.mxu1 %v438_v43 }
  0x41   :  { %484 = vmatpush.msrb.mxu0 %v421_v49  ;;  %504 = vmatpush.msrb.mxu1 %v437_v50  ;;  %v433_v50 = vld [vmem:[#allocation8 + $0xb0] sm:$0xff] }
  0x43   :  { %485 = vmatpush.msrb.mxu0 %v420_v56 }
  0xb2   :  { %v172_v4 = vpop.f32.mrf.mxu0  ;;  %v192_v5 = vpop.f32.mrf.mxu1 }
  0xb3   :  { %v780_v6 = vadd.f32 %v172_v4, %v147_v2  ;;  %v782_v7 = vadd.f32 %v192_v5, %v148_v3  ;;  %v436_v3 = vld [vmem:[#allocation8 + $0xc8] sm:$0xff]  ;;  %v455_v4 = vld [vmem:[#allocation8 + $0x160] sm:$0xff] }
  0xb4   :  { %v471_v5 = vld [vmem:[#allocation8 + $0x1e0] sm:$0xff]  ;;  %505 = vmatpush.msrb.mxu1 %v436_v3  ;;  %522 = vmatpush.msrb.mxu2 %v455_v4 }
  0xb5   :  { %v785_v10 = vmul.f32 0.70710677, %v780_v6  ;;  %v788_v11 = vmul.f32 0.70710677, %v782_v7  ;;  %542 = vmatpush.msrb.mxu3 %v471_v5  ;;  %v467_v3 = vld [vmem:[#allocation8 + $0x1c0] sm:$0xff] }
  0xb6   :  { %506 = vmatpush.msrb.mxu1 %v435_v24  ;;  %523 = vmatpush.msrb.mxu2 %v454_v29  ;;  %v415_v4 = vld [vmem:[#allocation8 + $0x20] sm:$0xff]  ;;  %v413_v24 = vld [vmem:[#allocation8 + $0x10] sm:$0xff]  ;;  %v464_v29 = vld [vmem:[#allocation8 + $0x1a8] sm:$0xff] }
  0xb7   :  { %v239_v16 = vmul.f32 %v785_v10, %v785_v10  ;;  %v279_v17 = vmul.f32 %v788_v11, %v788_v11  ;;  %v431_v5 = vld [vmem:[#allocation8 + $0xa0] sm:$0xff] }
  0xb9   :  { %v794_v20 = vmin.f32 %v239_v16, 16.0  ;;  %v796_v21 = vmin.f32 %v279_v17, 16.0  ;;  %v212_v22 = vpop.f32.mrf.mxu2  ;;  %v232_v23 = vpop.f32.mrf.mxu3 }
  0xba   :  { %v798_v27 = vadd.f32 %v212_v22, %v149_v14  ;;  %v800_v28 = vadd.f32 %v232_v23, %v150_v15  ;;  %v419_v23 = vld [vmem:[#allocation8 + $0x40] sm:$0xff] }
  0xbb   :  { %v241_v30 = vmul.f32 2.1237322e-06, %v794_v20  ;;  %v252_v31 = vmul.f32 3.8918573e-05, %v794_v20  ;;  %v281_v32 = vmul.f32 2.1237322e-06, %v796_v21  ;;  %486 = vmatpush.msrb.mxu0 %v419_v23 }
  0xbc   :  { %v292_v33 = vmul.f32 3.8918573e-05, %v796_v21  ;;  %v807_v34 = vmul.f32 0.70710677, %v798_v27  ;;  %v810_v35 = vmul.f32 0.70710677, %v800_v28 }
  0xbd   :  { %v242_v36 = vadd.f32 0.00028619796, %v241_v30  ;;  %v253_v37 = vadd.f32 0.001143296, %v252_v31  ;;  %v282_v38 = vadd.f32 0.00028619796, %v281_v32 }
  0xbe   :  { %v293_v39 = vadd.f32 0.001143296, %v292_v33  ;;  %v319_v40 = vmul.f32 %v807_v34, %v807_v34  ;;  %v359_v41 = vmul.f32 %v810_v35, %v810_v35  ;;  %v470_v30 = vld [vmem:[#allocation8 + $0x1d8] sm:$0xff] }
  0xbf   :  { %v243_v45 = vmul.f32 %v242_v36, %v794_v20  ;;  %v254_v46 = vmul.f32 %v253_v37, %v794_v20  ;;  %v283_v47 = vmul.f32 %v282_v38, %v796_v21  ;;  %v418_v31 = vld [vmem:[#allocation8 + $0x38] sm:$0xff]  ;;  %543 = vmatpush.msrb.mxu3 %v470_v30 }
  0xc0   :  { %v294_v51 = vmul.f32 %v293_v39, %v796_v21  ;;  %v820_v52 = vmin.f32 %v319_v40, 16.0  ;;  %v822_v53 = vmin.f32 %v359_v41, 16.0  ;;  %v434_v38 = vld [vmem:[#allocation8 + $0xb8] sm:$0xff]  ;;  %v453_v39 = vld [vmem:[#allocation8 + $0x150] sm:$0xff]  ;;  %487 = vmatpush.msrb.mxu0 %v418_v31 }
  0xc1   :  { %v244_v57 = vadd.f32 0.0036580483, %v243_v45  ;;  %v255_v58 = vadd.f32 0.014752088, %v254_v46  ;;  %v284_v59 = vadd.f32 0.0036580483, %v283_v47  ;;  %507 = vmatpush.msrb.mxu1 %v434_v38  ;;  %524 = vmatpush.msrb.mxu2 %v453_v39 }
  0xc2   :  { %v295_v60 = vadd.f32 0.014752088, %v294_v51  ;;  %v321_v61 = vmul.f32 2.1237322e-06, %v820_v52  ;;  %v332_v62 = vmul.f32 3.8918573e-05, %v820_v52 }
  0xc3   :  { %v245_v63 = vmul.f32 %v244_v57, %v794_v20  ;;  %v256_v0 = vmul.f32 %v255_v58, %v794_v20  ;;  %v285_v1 = vmul.f32 %v284_v59, %v796_v21  ;;  %v361_v2 = vmul.f32 2.1237322e-06, %v822_v53  ;;  %v469_v45 = vld [vmem:[#allocation8 + $0x1d0] sm:$0xff]  ;;  %v452_v51 = vld [vmem:[#allocation8 + $0x148] sm:$0xff]  ;;  %508 = vmatpush.msrb.mxu1 %v433_v50  ;;  %v447_v38 = vld [vmem:[#allocation8 + $0x120] sm:$0xff] }
  0xc4   :  { %v296_v8 = vmul.f32 %v295_v60, %v796_v21  ;;  %v322_v9 = vadd.f32 0.00028619796, %v321_v61  ;;  %v333_v12 = vadd.f32 0.001143296, %v332_v62  ;;  %v372_v13 = vmul.f32 3.8918573e-05, %v822_v53  ;;  %544 = vmatpush.msrb.mxu3 %v469_v45  ;;  %525 = vmatpush.msrb.mxu2 %v452_v51 }
  0xc5   :  { %v246_v14 = vadd.f32 0.05243302, %v245_v63  ;;  %v257_v15 = vadd.f32 0.112945676, %v256_v0  ;;  %v286_v16 = vadd.f32 0.05243302, %v285_v1 }
  0xc6   :  { %v297_v17 = vadd.f32 0.112945676, %v296_v8  ;;  %v323_v18 = vmul.f32 %v322_v9, %v820_v52  ;;  %v334_v19 = vmul.f32 %v333_v12, %v820_v52  ;;  %v362_v22 = vadd.f32 0.00028619796, %v361_v2  ;;  %v417_v46 = vld [vmem:[#allocation8 + $0x30] sm:$0xff]  ;;  %v416_v59 = vld [vmem:[#allocation8 + $0x28] sm:$0xff]  ;;  %545 = vmatpush.msrb.mxu3 %v468_v54 }
  0xc7   :  { %v258_v25 = vmul.f32 %v257_v15, %v794_v20  ;;  %v373_v26 = vadd.f32 0.001143296, %v372_v13  ;;  %v247_v32 = vmul.f32 %v246_v14, %v794_v20  ;;  %v287_v48 = vmul.f32 %v286_v16, %v796_v21  ;;  %488 = vmatpush.msrb.mxu0 %v417_v46  ;;  %v432_v60 = vld [vmem:[#allocation8 + $0xa8] sm:$0xff]  ;;  %v451_v63 = vld [vmem:[#allocation8 + $0x140] sm:$0xff]  ;;  %v450_v9 = vld [vmem:[#allocation8 + $0x138] sm:$0xff] }
  0xc8   :  { %v298_v33 = vmul.f32 %v297_v17, %v796_v21  ;;  %v324_v36 = vadd.f32 0.0036580483, %v323_v18  ;;  %v335_v37 = vadd.f32 0.014752088, %v334_v19  ;;  %v363_v41 = vmul.f32 %v362_v22, %v822_v53  ;;  %509 = vmatpush.msrb.mxu1 %v432_v60  ;;  %526 = vmatpush.msrb.mxu2 %v451_v63  ;;  %v466_v12 = vld [vmem:[#allocation8 + $0x1b8] sm:$0xff]  ;;  %v449_v17 = vld [vmem:[#allocation8 + $0x130] sm:$0xff] }
  0xc9   :  { %v259_v40 = vadd.f32 0.4994258, %v258_v25  ;;  %v374_v42 = vmul.f32 %v373_v26, %v822_v53  ;;  %v248_v55 = vadd.f32 0.18741608, %v247_v32  ;;  %489 = vmatpush.msrb.mxu0 %v416_v59  ;;  %v288_v8 = vadd.f32 0.18741608, %v287_v48  ;;  %546 = vmatpush.msrb.mxu3 %v467_v3 }
  0xca   :  { %v299_v43 = vadd.f32 0.4994258, %v298_v33  ;;  %v336_v44 = vmul.f32 %v335_v37, %v820_v52  ;;  %v325_v57 = vmul.f32 %v324_v36, %v820_v52  ;;  %v364_v62 = vadd.f32 0.0036580483, %v363_v41  ;;  %v414_v13 = vld [vmem:[#allocation8 + $0x18] sm:$0xff]  ;;  %510 = vmatpush.msrb.mxu1 %v431_v5  ;;  %527 = vmatpush.msrb.mxu2 %v450_v9  ;;  %v465_v18 = vld [vmem:[#allocation8 + $0x1b0] sm:$0xff] }
  0xcb   :  { %v260_v47 = vmul.f32 %v259_v40, %v794_v20  ;;  %v375_v49 = vadd.f32 0.014752088, %v374_v42  ;;  %490 = vmatpush.msrb.mxu0 %v415_v4  ;;  %v249_v14 = vmul.f32 %v248_v55, %v794_v20  ;;  %v430_v16 = vld [vmem:[#allocation8 + $0x98] sm:$0xff]  ;;  %547 = vmatpush.msrb.mxu3 %v466_v12  ;;  %v289_v25 = vmul.f32 %v288_v8, %v796_v21  ;;  %v429_v20 = vld [vmem:[#allocation8 + $0x90] sm:$0xff]  ;;  %v448_v26 = vld [vmem:[#allocation8 + $0x128] sm:$0xff] }
  0xcc   :  { %v300_v56 = vmul.f32 %v299_v43, %v796_v21  ;;  %v337_v58 = vadd.f32 0.112945676, %v336_v44  ;;  %v326_v15 = vadd.f32 0.05243302, %v325_v57  ;;  %v365_v19 = vmul.f32 %v364_v62, %v822_v53  ;;  %511 = vmatpush.msrb.mxu1 %v430_v16  ;;  %528 = vmatpush.msrb.mxu2 %v449_v17  ;;  %v412_v36 = vld [vmem:[#allocation8 + $0x8] sm:$0xff]  ;;  %v463_v40 = vld [vmem:[#allocation8 + $0x1a0] sm:$0xff] }
  0xcd   :  { %v844_v61 = vadd.f32 1.0, %v260_v47  ;;  %v376_v2 = vmul.f32 %v375_v49, %v822_v53  ;;  %491 = vmatpush.msrb.mxu0 %v414_v13  ;;  %548 = vmatpush.msrb.mxu3 %v465_v18  ;;  %v250_v30 = vadd.f32 1.1283791, %v249_v14  ;;  %v428_v37 = vld [vmem:[#allocation8 + $0x88] sm:$0xff]  ;;  %v411_v41 = vld [vmem:[#allocation8] sm:$0xff]  ;;  %v446_v46 = vld [vmem:[#allocation8 + $0x118] sm:$0xff] }
  0xce   :  { %v846_v0 = vadd.f32 1.0, %v300_v56  ;;  %v338_v1 = vmul.f32 %v337_v58, %v820_v52  ;;  %v327_v31 = vmul.f32 %v326_v15, %v820_v52  ;;  %512 = vmatpush.msrb.mxu1 %v429_v20  ;;  %529 = vmatpush.msrb.mxu2 %v448_v26  ;;  %v366_v21 = vadd.f32 0.05243302, %v365_v19  ;;  %v427_v42 = vld [vmem:[#allocation8 + $0x80] sm:$0xff]  ;;  %v462_v47 = vld [vmem:[#allocation8 + $0x198] sm:$0xff]  ;;  %v445_v51 = vld [vmem:[#allocation8 + $0x110] sm:$0xff] }
  0xcf   :  { %593 = vrcp.f32 %v844_v61  ;;  %v377_v23 = vadd.f32 0.112945676, %v376_v2  ;;  %492 = vmatpush.msrb.mxu0 %v413_v24  ;;  %549 = vmatpush.msrb.mxu3 %v464_v29  ;;  %v290_v48 = vadd.f32 1.1283791, %v289_v25  ;;  %v251_v54 = vmul.f32 %v250_v30, %v785_v10  ;;  %v461_v57 = vld [vmem:[#allocation8 + $0x190] sm:$0xff]  ;;  %v444_v63 = vld [vmem:[#allocation8 + $0x108] sm:$0xff] }
  0xd0   :  { %595 = vrcp.f32 %v846_v0  ;;  %v339_v22 = vadd.f32 0.4994258, %v338_v1  ;;  %513 = vmatpush.msrb.mxu1 %v428_v37  ;;  %530 = vmatpush.msrb.mxu2 %v447_v38  ;;  %v328_v56 = vadd.f32 0.18741608, %v327_v31  ;;  %v273_v58 = vand.u32 2147483648, %v844_v61  ;;  %v460_v3 = vld [vmem:[#allocation8 + $0x188] sm:$0xff] }
  0xd1   :  { %v378_v33 = vmul.f32 %v377_v23, %v822_v53  ;;  %493 = vmatpush.msrb.mxu0 %v412_v36  ;;  %550 = vmatpush.msrb.mxu3 %v463_v40  ;;  %v367_v60 = vmul.f32 %v366_v21, %v822_v53  ;;  %v271_v10 = vand.u32 2147483647, %v844_v61  ;;  %v313_v2 = vand.u32 2147483648, %v846_v0  ;;  %v443_v9 = vld [vmem:[#allocation8 + $0x100] sm:$0xff] }
  0xd2   :  { %v340_v32 = vmul.f32 %v339_v22, %v820_v52  ;;  %514 = vmatpush.msrb.mxu1 %v427_v42  ;;  %531 = vmatpush.msrb.mxu2 %v446_v46  ;;  %v311_v5 = vand.u32 2147483647, %v846_v0  ;;  %vm267_vm2 = vweird.f32 %v844_v61  ;;  %vm307_vm3 = vweird.f32 %v846_v0  ;;  %v459_v14 = vld [vmem:[#allocation8 + $0x180] sm:$0xff] }
  0xd3   :  { %v379_v50 = vadd.f32 0.4994258, %v378_v33  ;;  %494 = vmatpush.msrb.mxu0 %v411_v41  ;;  %551 = vmatpush.msrb.mxu3 %v462_v47  ;;  %v329_v13 = vmul.f32 %v328_v56, %v820_v52  ;;  %v274_v15 = vor.u32 1.1754944e-38, %v273_v58  ;;  %v368_v17 = vadd.f32 0.18741608, %v367_v60 }
  0xd4   :  { %v864_v45 = vadd.f32 1.0, %v340_v32  ;;  %532 = vmatpush.msrb.mxu2 %v445_v51  ;;  %vm272_vm5 = vcmp.eq.f32.partialorder %v271_v10, 8.507059e+37  ;;  %v314_v52 = vor.u32 1.1754944e-38, %v313_v2  ;;  %vm312_vm7 = vcmp.eq.f32.partialorder %v311_v5, 8.507059e+37 }
  0xd5   :  { %v858_v39 = vpop.eup %593  ;;  %v380_v62 = vmul.f32 %v379_v50, %v822_v53  ;;  %552 = vmatpush.msrb.mxu3 %v461_v57  ;;  %v330_v20 = vadd.f32 1.1283791, %v329_v13  ;;  %v369_v30 = vmul.f32 %v368_v17, %v822_v53 }
  0xd6   :  { %v860_v43 = vpop.eup %595  ;;  %v263_v44 = vmul.f32 %v858_v39, %v844_v61  ;;  %597 = vrcp.f32 %v864_v45  ;;  %vm268_vm0 = vweird.f32 %v858_v39  ;;  %533 = vmatpush.msrb.mxu2 %v444_v63  ;;  %v291_v61 = vmul.f32 %v290_v48, %v788_v11 }
  0xd7   :  { %v303_v49 = vmul.f32 %v860_v43, %v846_v0  ;;  %vm308_vm1 = vweird.f32 %v860_v43  ;;  %v880_v8 = vadd.f32 1.0, %v380_v62  ;;  %vm269_vm4 = vmor %vm267_vm2, %vm268_vm0  ;;  %553 = vmatpush.msrb.mxu3 %v460_v3  ;;  %v351_v31 = vand.u32 2147483647, %v864_v45 }
  0xd8   :  { %v264_v55 = vsub.f32 1.0, %v263_v44  ;;  %vm309_vm6 = vmor %vm307_vm3, %vm308_vm1  ;;  %534 = vmatpush.msrb.mxu2 %v443_v9  ;;  %v353_v32 = vand.u32 2147483648, %v864_v45  ;;  %vm347_vm9 = vweird.f32 %v864_v45  ;;  %v370_v42 = vadd.f32 1.1283791, %v369_v30 }
  0xd9   :  { %v304_v59 = vsub.f32 1.0, %v303_v49  ;;  %599 = vrcp.f32 %v880_v8  ;;  %554 = vmatpush.msrb.mxu3 %v459_v14  ;;  %vm352_vm11 = vcmp.eq.f32.partialorder %v351_v31, 8.507059e+37  ;;  %v391_v48 = vand.u32 2147483647, %v880_v8 }
  0xda   :  { %v265_v1 = vmul.f32 %v858_v39, %v264_v55  ;;  %v393_v49 = vand.u32 2147483648, %v880_v8  ;;  %vm387_vm13 = vweird.f32 %v880_v8  ;;  %v371_v58 = vmul.f32 %v370_v42, %v810_v35 }
  0xdb   :  { %v305_v4 = vmul.f32 %v860_v43, %v304_v59  ;;  %vm392_vm15 = vcmp.eq.f32.partialorder %v391_v48, 8.507059e+37 }
  0xdc   :  { %v266_v12 = vadd.f32 %v858_v39, %v265_v1  ;;  %v598_v18 = vpop.eup %597  ;;  %v394_v57 = vor.u32 1.1754944e-38, %v393_v49 }
  0xdd   :  { %v306_v16 = vadd.f32 %v860_v43, %v305_v4  ;;  %v343_v23 = vmul.f32 %v598_v18, %v864_v45  ;;  %vm348_vm8 = vweird.f32 %v598_v18  ;;  %v592_v4 = vld [vmem:[%s920_s4] ss:$0 sm:$0xff] }
  0xde   :  { %v270_v19 = vsel %vm269_vm4, %v858_v39, %v266_v12  ;;  %v331_v39 = vmul.f32 %v330_v20, %v807_v34  ;;  %vm349_vm10 = vmor %vm347_vm9, %vm348_vm8 }
  0xdf   :  { %v275_v0 = vsel %vm272_vm5, %v274_v15, %v270_v19  ;;  %v310_v22 = vsel %vm309_vm6, %v860_v43, %v306_v16  ;;  %v344_v29 = vsub.f32 1.0, %v343_v23  ;;  %v600_v33 = vpop.eup %599  ;;  %v354_v43 = vor.u32 1.1754944e-38, %v353_v32 }
  0xe0   :  { %v276_v24 = vmul.f32 %v275_v0, %v251_v54  ;;  %v315_v25 = vsel %vm312_vm7, %v314_v52, %v310_v22  ;;  %v383_v21 = vmul.f32 %v600_v33, %v880_v8  ;;  %vm388_vm12 = vweird.f32 %v600_v33 }
  0xe1   :  { %v316_v26 = vmul.f32 %v315_v25, %v291_v61  ;;  %v345_v37 = vmul.f32 %v598_v18, %v344_v29  ;;  %vm389_vm14 = vmor %vm387_vm13, %vm388_vm12 }
  0xe2   :  { %v579_v11 = vclamps-f32 %v276_v24, 1.0  ;;  %v384_v44 = vsub.f32 1.0, %v383_v21 }
  0xe3   :  { %v580_v36 = vclamps-f32 %v316_v26, 1.0  ;;  %v346_v41 = vadd.f32 %v598_v18, %v345_v37 }
  0xe4   :  { %v399_v38 = vadd.f32 1.0, %v579_v11  ;;  %v385_v51 = vmul.f32 %v600_v33, %v384_v44 }
  0xe5   :  { %v400_v40 = vadd.f32 1.0, %v580_v36  ;;  %v350_v47 = vsel %vm349_vm10, %v598_v18, %v346_v41 }
  0xe6   :  { %v403_v53 = vmul.f32 0.5, %v399_v38  ;;  %v355_v50 = vsel %vm352_vm11, %v354_v43, %v350_v47  ;;  %v386_v55 = vadd.f32 %v600_v33, %v385_v51 }
  0xe7   :  { %v404_v46 = vmul.f32 0.5, %v400_v40  ;;  %v356_v45 = vmul.f32 %v355_v50, %v331_v39 }
  0xe8   :  { %v407_v34 = vmul.f32 %v403_v53, %v780_v6  ;;  %v390_v59 = vsel %vm389_vm14, %v600_v33, %v386_v55 }
  0xe9   :  { %v408_v54 = vmul.f32 %v404_v46, %v782_v7  ;;  %v581_v56 = vclamps-f32 %v356_v45, 1.0  ;;  %v395_v6 = vsel %vm392_vm15, %v394_v57, %v390_v59 }
  0xea   :  { %495 = vmatmul.f32.vlgmr.msrb.gmra.mxu0 %v407_v34  ;;  %v396_v62 = vmul.f32 %v395_v6, %v371_v58 }
  0xeb   :  { %515 = vmatmul.f32.vlgmr.msrb.gmra.mxu1 %v408_v54  ;;  %v401_v60 = vadd.f32 1.0, %v581_v56 }
  0xec   :  { %v582_v1 = vclamps-f32 %v396_v62, 1.0 }
  0xed   :  { %v405_v63 = vmul.f32 0.5, %v401_v60 }
  0xee   :  { %v402_v10 = vadd.f32 1.0, %v582_v1 }
  0xef   :  { %v409_v7 = vmul.f32 %v405_v63, %v798_v27 }
  0xf0   :  { %v406_v2 = vmul.f32 0.5, %v402_v10 }
  0xf1   :  { %535 = vmatmul.f32.vlgmr.msrb.gmra.mxu2 %v409_v7 }
  0xf2   :  { %v410_v3 = vmul.f32 %v406_v2, %v800_v28 }
  0xf4   :  { %555 = vmatmul.f32.vlgmr.msrb.gmra.mxu3 %v410_v3 }
 0x167   :  { %v496_v35 = vpop.f32.mrf.mxu0 }
 0x168   :  { %v497_v5 = vadd.f32 %v592_v4, %v496_v35  ;;  %v516_v8 = vpop.f32.mrf.mxu1 }
 0x16a   :  { %v517_v9 = vadd.f32 %v516_v8, %v497_v5 }
 0x174   :  { %v536_v12 = vpop.f32.mrf.mxu2 }
 0x175   :  { %v537_v13 = vadd.f32 %v536_v12, %v517_v9 }
 0x177   :  { %v556_v27 = vpop.f32.mrf.mxu3 }
 0x178   :  { %v557_v14 = vadd.f32 %v556_v27, %v537_v13 }
 0x17a   :  { %559 = vst [vmem:[#allocation10] sm:$0xff] %v557_v14 }
 0x17b   :  { %570 = dma.vmem_to_hbm [thread:$0]  %s566_s16, 128, %s568_s19, [#allocation4]  }
 0x17c   :  { %727 = dma.done.wait [#allocation4], 128  }
 0x17d   :  { %728 = vsyncadd [#allocation4], 4294967168 }
 0x17e   :  { %575 = vsyncpa [#allocation3], 1 }
 0x17f   :  { %576 = vsyncpa [#allocation6], 1 }
 0x180   :  { %577 = vsyncpa [#allocation9], 1 }
 0x181   :  { %578 = vsyncpa [#allocation4], 1 }

</bundles_post_ra>
